<compile_context>
chip_gen: v7x
topology: tpu7x:2x2x1
jax: 0.10.0
libtpu: 0.0.40
codegen_flags: <defaults>
</compile_context>

<pallas_src>
import jax
import jax.numpy as jnp
from jax.experimental import pallas as pl
from jax.experimental.pallas import tpu as pltpu

STATE_SPACE_SIZE = 2
H = 16


def _mlp_kernel(x_ref, w1t_ref, b1_ref, w2t_ref, b2_ref, w3_ref, b3_ref, o_ref):
    # x_ref:   (2, TB)    batch on lanes
    # w1t_ref: (16, 2)    W1^T        b1_ref: (16, 1)
    # w2t_ref: (16, 16)   W2^T        b2_ref: (16, 1)
    # w3_ref:  (16, 1)    W3 column   b3_ref: (1, 1)
    # o_ref:   (1, TB)
    x = x_ref[...]                                                # (2, TB)

    # Layer 1 (2 -> 16): MXU matmul (K=2, zero-padded by the compiler);
    # bias + ReLU on the VPU.
    h1 = jnp.dot(w1t_ref[...], x, preferred_element_type=jnp.float32)
    h1 = jnp.maximum(h1 + b1_ref[...], 0.0)                       # (16, TB)

    # Layer 2 (16 -> 16): MXU matmul.
    h2 = jnp.dot(w2t_ref[...], h1, preferred_element_type=jnp.float32)
    h2 = jnp.maximum(h2 + b2_ref[...], 0.0)                       # (16, TB)

    # Layer 3 (16 -> 1): VPU multiply + XLU sublane reduce.
    out = jnp.sum(w3_ref[...] * h2, axis=0, keepdims=True) + b3_ref[...]
    # TODO(synk): if profiling on v5e shows the single store slot binding,
    # restripe this (1, TB) block into dense 8-sublane vregs before storing.
    o_ref[...] = out.astype(o_ref.dtype)                          # (1, TB)


def _round_up(n, m):
    return ((n + m - 1) // m) * m


def lyapunov_net(x, params, *, max_tile_b=65536):
    """x: (B, STATE_SPACE_SIZE) float32 -> (B, 1) float32 via the Pallas kernel."""
    w1, b1, w2, b2, w3, b3 = params
    B = x.shape[0]

    # Lane-granule guard: the tile is a multiple of 128 no matter what the
    # caller passed for max_tile_b.
    max_tile_b = max(128, (int(max_tile_b) // 128) * 128)
    b128 = _round_up(B, 128)
    # Aim for >= 2 grid steps once the batch spans more than one lane granule
    # so the "parallel" axis can shard across the two TensorCores on v7x,
    # capped at max_tile_b lanes per step.
    tile_b = min(max_tile_b, max(128, _round_up((b128 + 1) // 2, 128)))
    b_pad = _round_up(b128, tile_b)

    # Feature-major input (batch on lanes) + pad to the tile grid.  XLA fuses
    # the transpose and pad into one copy.
    xt = x.astype(jnp.float32).T                          # (2, B)
    if b_pad != B:
        xt = jnp.pad(xt, ((0, 0), (0, b_pad - B)))        # (2, b_pad)

    # Parameters in exactly the layouts the kernel consumes; all stay resident
    # in VMEM across grid steps via constant index_maps (one DMA each).
    w1t = w1.T.astype(jnp.float32)                        # (16, 2)
    w2t = w2.T.astype(jnp.float32)                        # (16, 16)
    b1c = b1.reshape(H, 1).astype(jnp.float32)            # (16, 1)
    b2c = b2.reshape(H, 1).astype(jnp.float32)            # (16, 1)
    w3c = w3.reshape(H, 1).astype(jnp.float32)            # (16, 1)
    b3c = b3.reshape(1, 1).astype(jnp.float32)            # (1, 1)

    grid = (b_pad // tile_b,)

    out_t = pl.pallas_call(
        _mlp_kernel,
        out_shape=jax.ShapeDtypeStruct((1, b_pad), jnp.float32),
        grid_spec=pltpu.PrefetchScalarGridSpec(
            num_scalar_prefetch=0,
            grid=grid,
            in_specs=[
                pl.BlockSpec((2, tile_b), lambda i: (0, i)),             # x tile
                pl.BlockSpec((H, STATE_SPACE_SIZE), lambda i: (0, 0)),   # W1^T
                pl.BlockSpec((H, 1), lambda i: (0, 0)),                  # b1
                pl.BlockSpec((H, H), lambda i: (0, 0)),                  # W2^T
                pl.BlockSpec((H, 1), lambda i: (0, 0)),                  # b2
                pl.BlockSpec((H, 1), lambda i: (0, 0)),                  # W3
                pl.BlockSpec((1, 1), lambda i: (0, 0)),                  # b3
            ],
            out_specs=pl.BlockSpec((1, tile_b), lambda i: (0, i)),       # lane-dense
        ),
        compiler_params=pltpu.CompilerParams(
            dimension_semantics=("parallel",),          # megacore sharding on v7x
            vmem_limit_bytes=48 * 1024 * 1024,          # safe on v5e/v6e/v7x
        ),
    )(xt, w1t, b1c, w2t, b2c, w3c, b3c)

    return out_t[:, :B].T                               # (B, 1)


def init_params(key):
    """Deterministic init mirroring PyTorch nn.Linear default
    (uniform in [-1/sqrt(fan_in), 1/sqrt(fan_in)])."""
    keys = jax.random.split(key, 6)

    def linear(kw, kb, fan_in, fan_out):
        bound = 1.0 / jnp.sqrt(fan_in)
        # stored as (in, out) so the math is x @ W + b, matching nn.Linear.
        w = jax.random.uniform(kw, (fan_in, fan_out), jnp.float32, -bound, bound)
        b = jax.random.uniform(kb, (1, fan_out), jnp.float32, -bound, bound)
        return w, b

    w1, b1 = linear(keys[0], keys[1], STATE_SPACE_SIZE, H)
    w2, b2 = linear(keys[2], keys[3], H, H)
    w3, b3 = linear(keys[4], keys[5], H, 1)
    return (w1, b1, w2, b2, w3, b3)


def reference(x, params):
    w1, b1, w2, b2, w3, b3 = params
    h1 = jnp.maximum(x @ w1 + b1, 0.0)
    h2 = jnp.maximum(h1 @ w2 + b2, 0.0)
    return h2 @ w3 + b3


if __name__ == "__main__":
    key = jax.random.PRNGKey(0)
    kp, kx1, kx2 = jax.random.split(key, 3)
    params = init_params(kp)

    # Tiny batch: single 128-lane tile, grid=1.
    x_small = jax.random.normal(kx1, (8, STATE_SPACE_SIZE), jnp.float32)
    out_small = jax.block_until_ready(lyapunov_net(x_small, params))
    ref_small = reference(x_small, params)
    assert out_small.shape == (8, 1)
    assert jnp.allclose(out_small, ref_small, atol=2e-5, rtol=2e-5)

    # Non-tile-multiple batch: exercises padding + a 2-step "parallel" grid
    # (tile_b=512, grid=2 -> both TensorCores on v7x).
    x_big = jax.random.normal(kx2, (1000, STATE_SPACE_SIZE), jnp.float32)
    out_big = jax.block_until_ready(lyapunov_net(x_big, params))
    ref_big = reference(x_big, params)
    assert out_big.shape == (1000, 1)
    assert jnp.allclose(out_big, ref_big, atol=2e-5, rtol=2e-5)

    print("KERNEL_OK")
</pallas_src>

<mosaic_0001>
module attributes {stable_mosaic.version = 11 : i64} {
  func.func @_mlp_kernel(%arg0: i32, %arg1: memref<2x128xf32, #tpu.memory_space<vmem>>, %arg2: memref<16x2xf32, #tpu.memory_space<vmem>>, %arg3: memref<16x1xf32, #tpu.memory_space<vmem>>, %arg4: memref<16x16xf32, #tpu.memory_space<vmem>>, %arg5: memref<16x1xf32, #tpu.memory_space<vmem>>, %arg6: memref<16x1xf32, #tpu.memory_space<vmem>>, %arg7: memref<1x1xf32, #tpu.memory_space<vmem>>, %arg8: memref<1x128xf32, #tpu.memory_space<vmem>>) attributes {dimension_semantics = [#tpu.dimension_semantics<parallel>], iteration_bounds = array<i64: 1>, scalar_prefetch = 0 : i64, scratch_operands = 0 : i64, tpu.core_type = #tpu.core_type<tc>, window_params = [{transform_indices = @transform_0, window_bounds = array<i64: 2, 128>}, {pipeline_mode = #tpu.pipeline_mode<synchronous>, transform_indices = @transform_1, window_bounds = array<i64: 16, 2>}, {pipeline_mode = #tpu.pipeline_mode<synchronous>, transform_indices = @transform_2, window_bounds = array<i64: 16, 1>}, {pipeline_mode = #tpu.pipeline_mode<synchronous>, transform_indices = @transform_3, window_bounds = array<i64: 16, 16>}, {pipeline_mode = #tpu.pipeline_mode<synchronous>, transform_indices = @transform_4, window_bounds = array<i64: 16, 1>}, {pipeline_mode = #tpu.pipeline_mode<synchronous>, transform_indices = @transform_5, window_bounds = array<i64: 16, 1>}, {pipeline_mode = #tpu.pipeline_mode<synchronous>, transform_indices = @transform_6, window_bounds = array<i64: 1, 1>}, {transform_indices = @transform_7, window_bounds = array<i64: 1, 128>}]} {
    %c0 = arith.constant 0 : index
    %c0_0 = arith.constant 0 : index
    %0 = vector.load %arg1[%c0, %c0_0] : memref<2x128xf32, #tpu.memory_space<vmem>>, vector<2x128xf32>
    %c0_1 = arith.constant 0 : index
    %c0_2 = arith.constant 0 : index
    %1 = vector.load %arg2[%c0_1, %c0_2] : memref<16x2xf32, #tpu.memory_space<vmem>>, vector<16x2xf32>
    %cst = arith.constant dense<0.000000e+00> : vector<16x128xf32>
    %2 = tpu.matmul %1, %0, %cst {dimension_numbers = #tpu.dot_dimension_numbers<[1], [0], [0], [1], [0, 0, 1, 1], [], []>} : vector<16x2xf32>, vector<2x128xf32>, vector<16x128xf32> -> vector<16x128xf32>
    %c0_3 = arith.constant 0 : index
    %c0_4 = arith.constant 0 : index
    %3 = vector.load %arg3[%c0_3, %c0_4] : memref<16x1xf32, #tpu.memory_space<vmem>>, vector<16x1xf32>
    %4 = vector.broadcast %3 : vector<16x1xf32> to vector<16x128xf32>
    %5 = arith.addf %2, %4 : vector<16x128xf32>
    %cst_5 = arith.constant 0.000000e+00 : f32
    %6 = vector.broadcast %cst_5 : f32 to vector<16x128xf32>
    %7 = arith.maximumf %5, %6 : vector<16x128xf32>
    %c0_6 = arith.constant 0 : index
    %c0_7 = arith.constant 0 : index
    %8 = vector.load %arg4[%c0_6, %c0_7] : memref<16x16xf32, #tpu.memory_space<vmem>>, vector<16x16xf32>
    %cst_8 = arith.constant dense<0.000000e+00> : vector<16x128xf32>
    %9 = tpu.matmul %8, %7, %cst_8 {dimension_numbers = #tpu.dot_dimension_numbers<[1], [0], [0], [1], [0, 0, 1, 1], [], []>} : vector<16x16xf32>, vector<16x128xf32>, vector<16x128xf32> -> vector<16x128xf32>
    %c0_9 = arith.constant 0 : index
    %c0_10 = arith.constant 0 : index
    %10 = vector.load %arg5[%c0_9, %c0_10] : memref<16x1xf32, #tpu.memory_space<vmem>>, vector<16x1xf32>
    %11 = vector.broadcast %10 : vector<16x1xf32> to vector<16x128xf32>
    %12 = arith.addf %9, %11 : vector<16x128xf32>
    %cst_11 = arith.constant 0.000000e+00 : f32
    %13 = vector.broadcast %cst_11 : f32 to vector<16x128xf32>
    %14 = arith.maximumf %12, %13 : vector<16x128xf32>
    %c0_12 = arith.constant 0 : index
    %c0_13 = arith.constant 0 : index
    %15 = vector.load %arg6[%c0_12, %c0_13] : memref<16x1xf32, #tpu.memory_space<vmem>>, vector<16x1xf32>
    %16 = vector.broadcast %15 : vector<16x1xf32> to vector<16x128xf32>
    %17 = arith.mulf %16, %14 : vector<16x128xf32>
    %cst_14 = arith.constant dense<0.000000e+00> : vector<128xf32>
    %18 = vector.multi_reduction <add>, %17, %cst_14 [0] : vector<16x128xf32> to vector<128xf32>
    %19 = vector.shape_cast %18 : vector<128xf32> to vector<1x128xf32>
    %c0_15 = arith.constant 0 : index
    %c0_16 = arith.constant 0 : index
    %20 = vector.load %arg7[%c0_15, %c0_16] : memref<1x1xf32, #tpu.memory_space<vmem>>, vector<1x1xf32>
    %21 = vector.broadcast %20 : vector<1x1xf32> to vector<1x128xf32>
    %22 = arith.addf %19, %21 : vector<1x128xf32>
    %c0_17 = arith.constant 0 : index
    %c0_18 = arith.constant 0 : index
    %23 = vector.load %arg8[%c0_17, %c0_18] : memref<1x128xf32, #tpu.memory_space<vmem>>, vector<1x128xf32>
    tpu.vector_store %arg8[%c0_17, %c0_18], %22 {strides = array<i32>} : memref<1x128xf32, #tpu.memory_space<vmem>>, vector<1x128xf32>,
    return
  }
  func.func @transform_0(%arg0: i32) -> (i32, i32) {
    %c0_i32 = arith.constant 0 : i32
    %c0_i32_0 = arith.constant 0 : i32
    return %c0_i32, %arg0 : i32, i32
  }
  func.func @transform_1(%arg0: i32) -> (i32, i32) {
    %c0_i32 = arith.constant 0 : i32
    %c0_i32_0 = arith.constant 0 : i32
    %c0_i32_1 = arith.constant 0 : i32
    return %c0_i32, %c0_i32_0 : i32, i32
  }
  func.func @transform_2(%arg0: i32) -> (i32, i32) {
    %c0_i32 = arith.constant 0 : i32
    %c0_i32_0 = arith.constant 0 : i32
    %c0_i32_1 = arith.constant 0 : i32
    return %c0_i32, %c0_i32_0 : i32, i32
  }
  func.func @transform_3(%arg0: i32) -> (i32, i32) {
    %c0_i32 = arith.constant 0 : i32
    %c0_i32_0 = arith.constant 0 : i32
    %c0_i32_1 = arith.constant 0 : i32
    return %c0_i32, %c0_i32_0 : i32, i32
  }
  func.func @transform_4(%arg0: i32) -> (i32, i32) {
    %c0_i32 = arith.constant 0 : i32
    %c0_i32_0 = arith.constant 0 : i32
    %c0_i32_1 = arith.constant 0 : i32
    return %c0_i32, %c0_i32_0 : i32, i32
  }
  func.func @transform_5(%arg0: i32) -> (i32, i32) {
    %c0_i32 = arith.constant 0 : i32
    %c0_i32_0 = arith.constant 0 : i32
    %c0_i32_1 = arith.constant 0 : i32
    return %c0_i32, %c0_i32_0 : i32, i32
  }
  func.func @transform_6(%arg0: i32) -> (i32, i32) {
    %c0_i32 = arith.constant 0 : i32
    %c0_i32_0 = arith.constant 0 : i32
    %c0_i32_1 = arith.constant 0 : i32
    return %c0_i32, %c0_i32_0 : i32, i32
  }
  func.func @transform_7(%arg0: i32) -> (i32, i32) {
    %c0_i32 = arith.constant 0 : i32
    %c0_i32_0 = arith.constant 0 : i32
    return %c0_i32, %arg0 : i32, i32
  }
}

</mosaic_0001>

<bundles_post_ra>
// kernel: tpu_custom_call.1
= control target key start
LH: loop header
LB: loop body
LE: loop exit
PB: predicated region body
PF: predicated region fallthrough
CT: control target
= control target key end

     0   :  { %s425_s0 = inlined_call_operand.vmem [shape: f32[2,128], index: 0, kind: input, shape index: {}]   ;;  %s426_s1 = inlined_call_operand.vmem [shape: f32[16,2], index: 1, kind: input, shape index: {}]   ;;  %s427_s2 = inlined_call_operand.vmem [shape: f32[16,1], index: 2, kind: input, shape index: {}]   ;;  %s428_s3 = inlined_call_operand.vmem [shape: f32[16,16], index: 3, kind: input, shape index: {}]   ;;  %s429_s4 = inlined_call_operand.vmem [shape: f32[16,1], index: 4, kind: input, shape index: {}]   ;;  %s430_s5 = inlined_call_operand.vmem [shape: f32[16,1], index: 5, kind: input, shape index: {}]   ;;  %s431_s6 = inlined_call_operand.<no memory space> [shape: f32[1,1], index: 6, kind: input, shape index: {}]   ;;  %s432_s7 = inlined_call_operand.hbm [shape: f32[1,128], index: 7, kind: output, shape index: {}]  }
   0x1   :  { %v12_v0 = vstv %s431_s6 }
   0x2   :  { %13 = vst [vmem:[#allocation2] sm:$0x1] %v12_v0 }
   0x3   :  { %v29_v1 = vld [vmem:[%s425_s0] sm:$0x3]  ;;  %vm51_vm0 = vcmask 1041408   ;;  %vm44_vm1 = vcmask 15360   ;;  %v31_v3 = vld [vmem:[%s426_s1 + $0x8] sm:$0xff]  ;;  %v333_v5 = vmov 0  }
   0x4   :  { %v30_v2 = vld [vmem:[%s426_s1] sm:$0xff]  ;;  %289 = vmatprep.subr.msk.mxu0 %vm51_vm0, %v29_v1  ;;  %307 = vset.pattern.permute.xlu0 %v333_v5 }
   0x5   :  { %291 = vmatprep.mubr.msk.f32.mxu0 %vm44_vm1, %v30_v2  ;;  %v32_v4 = vld [vmem:[%s427_s2] sm:$0xff]  ;;  %290 = vmatpush3.msk.msra.mxu0 %vm51_vm0, %v29_v1 }
   0x6   :  { %14 = vsyncpa [#allocation4], 0  ;;  %292 = vmatmul.mubr.msk.f32.vlgmr.msra.gmra.mrb[0].mxu0 %vm44_vm1, %v31_v3  ;;  %36 = vperm.xlu0 %307, %v32_v4   ;;  %v33_v6 = vld [vmem:[%s427_s2 + $0x8] sm:$0xff]  ;;  %v230_v7 = vld [vmem:[%s430_s5] sm:$0xff]  ;;  %vm146_vm2 = vcmask 130048   ;;  %v257_v35 = vlaneseq }
   0x7   :  { %308 = vset.pattern.permute.xlu1 %v333_v5  ;;  %v132_v9 = vld [vmem:[%s428_s3] sm:$0xff]  ;;  %v135_v11 = vld [vmem:[%s429_s4 + $0x8] sm:$0xff] }
   0x8   :  { %298 = vmatprep.mubr.msk.f32.mxu1 %vm146_vm2, %v132_v9  ;;  %v134_v10 = vld [vmem:[%s429_s4] sm:$0xff]  ;;  %v231_v12 = vld [vmem:[%s430_s5 + $0x8] sm:$0xff]  ;;  %v258_v38 = vshrl.u32 %v257_v35, 7 }
   0x9   :  { %v251_v8 = vld [vmem:[#allocation2] sm:$0x1]  ;;  %138 = vperm.xlu1 %308, %v134_v10   ;;  %v133_v22 = vld [vmem:[%s428_s3 + $0x8] sm:$0xff]  ;;  %s334_s3 = smov [#allocation3]  }
   0xa   :  { %41 = vperm.xlu0 %307, %v33_v6   ;;  %v259_v41 = vsub.s32 0, %v258_v38  ;;  %s269_s4 = sshll.u32 %s334_s3, 4  ;;  %s270_s4 = int_to_ptr.vmem [resolvable:$true] %s269_s4 }
   0xb   :  { %s309_s5 = scalar_lea.vmem %s270_s4, 16  ;;  %s313_s21 = scalar_lea.vmem %s270_s4, 32 }
   0xc   :  { %p310_p0 = scmp.ne.s32.totalorder %s270_s4, %s309_s5  ;;  %p314_p1 = scmp.lt.s32.totalorder %s270_s4, %s270_s4 }
   0xd   :  { %143 = vperm.xlu1 %308, %v135_v11   ;;  %p315_p2 = scmp.lt.s32.totalorder %s313_s21, %s309_s5 }
   0xe   :  { %234 = vperm.xlu0 %307, %v230_v7  }
   0xf   :  { %p316_p3 = por %p315_p2, %p314_p1 }
  0x11   :  { %239 = vperm.xlu1 %308, %v231_v12   ;;  %p317_p4 = pnand %p316_p3, %p310_p0 }
  0x12   :  { %254 = vperm.xlu0 %307, %v251_v8  }
  0x85   :  { %v37_v13 = vpop.permute.xlu0 %36 }
  0x88   :  { %v139_v23 = vpop.permute.xlu1 %138 }
  0x89   :  { %v42_v14 = vpop.permute.xlu0 %41 }
  0x8c   :  { %v144_v24 = vpop.permute.xlu1 %143 }
  0x8d   :  { %v235_v32 = vpop.permute.xlu0 %234 }
  0x90   :  { %v240_v30 = vpop.permute.xlu1 %239 }
  0x91   :  { %v255_v43 = vpop.permute.xlu0 %254 }
  0x92   :  { %v260_v45 = vrot.slane %v255_v43, %v259_v41 }
  0xd9   :  { %v293_v15 = vpop.f32.mrb[0].mxu0 }
  0xda   :  { %v127_v16 = vadd.f32 %v293_v15, %v42_v14  ;;  %v121_v17 = vpop.f32.mrb[1].mxu0 }
  0xdb   :  { %v122_v18 = vadd.f32 %v121_v17, %v37_v13 }
  0xdc   :  { %v131_v19 = vmax.f32 %v127_v16, 0.0 }
  0xdd   :  { %v130_v20 = vmax.f32 %v122_v18, 0.0 }
  0xdf   :  { %v301_v21 = vpack.c.bf16 %v131_v19, %v130_v20 }
  0xe1   :  { %302 = vmatprep.subr.bf16.mxu1 %v301_v21 }
  0xe2   :  { %304 = vmatpush3.bf16.msra.mxu1 %v301_v21 }
  0xe5   :  { %299 = vmatmul.mubr.msk.f32.vlgmr.msra.gmra.mrb[0].mxu1 %vm146_vm2, %v133_v22 }
 0x1b8   :  { %v300_v25 = vpop.f32.mrb[0].mxu1 }
 0x1b9   :  { %v225_v26 = vadd.f32 %v300_v25, %v144_v24  ;;  %v219_v27 = vpop.f32.mrb[1].mxu1 }
 0x1ba   :  { %v220_v28 = vadd.f32 %v219_v27, %v139_v23 }
 0x1bb   :  { %v229_v29 = vmax.f32 %v225_v26, 0.0 }
 0x1bc   :  { %v228_v31 = vmax.f32 %v220_v28, 0.0 }
 0x1bd   :  { %v243_v33 = vmul.f32 %v240_v30, %v229_v29 }
 0x1be   :  { %v242_v34 = vmul.f32 %v235_v32, %v228_v31 }
 0x1c0   :  { %v244_v36 = vadd.f32 %v243_v33, %v242_v34 }
 0x1c2   :  { %v245_v37 = vrot.slane %v244_v36, 4 }
 0x1c4   :  { %v246_v39 = vadd.f32 %v245_v37, %v244_v36 }
 0x1c6   :  { %v247_v40 = vrot.slane %v246_v39, 2 }
 0x1c8   :  { %v248_v42 = vadd.f32 %v247_v40, %v246_v39 }
 0x1ca   :  { %v249_v44 = vrot.slane %v248_v42, 1 }
 0x1cc   :  { %v250_v46 = vadd.f32 %v249_v44, %v248_v42 }
 0x1ce   :  { %v261_v47 = vadd.f32 %v260_v45, %v250_v46 }
 0x1d0   :  { %262 = vst [vmem:[#allocation3] sm:$0x1] %v261_v47 }
 0x1d1   :  { %320 = shalt.err (!%p317_p4)
}
 0x1d2   :  { %s321_s24 = scalar_lea.hbm %s432_s7, 16 }
 0x1d3   :  { %p322_p5 = scmp.ne.s32.totalorder %s432_s7, %s321_s24  ;;  %p325_p6 = scmp.lt.u32.totalorder %s321_s24, %s432_s7 }
 0x1d5   :  { %p327_p7 = pnand %p325_p6, %p322_p5 }
 0x1d7   :  { %330 = shalt.err (!%p327_p7)
}
 0x1d8   :  { %272 = dma.vmem_to_hbm [thread:$0]  %s270_s4, 16, %s432_s7, [#allocation4]  }
 0x1d9   :  { %331 = dma.done.wait [#allocation4], 16  }
 0x1da   :  { %332 = vsyncadd [#allocation4], 4294967280 }
 0x1db   :  { %276 = vsyncpa [#allocation4], 1 }

</bundles_post_ra>
